<compile_context>
chip_gen: v7x
topology: tpu7x:2x2x1
jax: 0.10.0
libtpu: 0.0.40
codegen_flags: <defaults>
</compile_context>

<pallas_src>
import functools
import math

import jax
import jax.numpy as jnp
from jax import lax
from jax.experimental import pallas as pl
from jax.experimental.pallas import tpu as pltpu


def _round_up(x, m):
    return ((x + m - 1) // m) * m


def _maxpool_head_kernel(x_ref, w_ref, b_ref, o_ref, acc_ref, *,
                         ts, s_actual, s_padded):
    # x_ref:  (TB, TS, Dp)   batch-tile of the input slab
    # w_ref:  (Dp, Cp)       full (padded) weight, resident across the grid
    # b_ref:  (1, Cp)        padded bias
    # o_ref:  (TB, Cp)       lane-dense output block (same block across seq axis)
    # acc_ref:(TB, Cp) f32   running-max accumulator scratch
    si = pl.program_id(1)

    @pl.when(si == 0)
    def _init():
        acc_ref[...] = jnp.full(acc_ref.shape, -jnp.inf, dtype=acc_ref.dtype)

    tb, ts_blk, dp = x_ref.shape
    cp = w_ref.shape[1]

    # One big matmul per step: (TB*TS, Dp) @ (Dp, Cp) on the MXU, f32 accumulate.
    x = x_ref[...].reshape(tb * ts_blk, dp)
    logits = jnp.dot(x, w_ref[...], preferred_element_type=jnp.float32)
    logits = logits.reshape(tb, ts_blk, cp)

    # Mask padded sequence rows with -inf (only compiled in when S was padded).
    if s_padded != s_actual:
        row = si * ts + lax.broadcasted_iota(jnp.int32, (tb, ts_blk, 1), 1)
        logits = jnp.where(row < s_actual, logits, -jnp.inf)

    acc_ref[...] = jnp.maximum(acc_ref[...], jnp.max(logits, axis=1))

    @pl.when(si == pl.num_programs(1) - 1)
    def _finish():
        # bias after the max: max(xW + b) == max(xW) + b
        o_ref[...] = (acc_ref[...] + b_ref[...]).astype(o_ref.dtype)


def max_pooling_forward(x, weight, bias, *, tb=8, compute_dtype=None,
                        max_x_block_bytes=8 << 20):
    """x: (B, S, D); weight: (D, C); bias: (C,). Returns (B, C) in x.dtype.

    compute_dtype: optionally jnp.bfloat16 to halve HBM traffic on x/weight
    (accumulation stays f32 via preferred_element_type; max stays f32).
    """
    B, S, D = x.shape
    C = weight.shape[1]
    out_dtype = x.dtype

    dp = _round_up(D, 128)
    cp = _round_up(C, 128)
    bp = _round_up(B, tb)

    # Sequence tile: largest multiple of 8 such that one x block fits the budget.
    elem_bytes = jnp.dtype(compute_dtype if compute_dtype is not None
                           else x.dtype).itemsize
    ts_cap = max(8, (max_x_block_bytes // (tb * dp * elem_bytes)) // 8 * 8)
    ts = min(ts_cap, _round_up(S, 8))
    sp = _round_up(S, ts)

    x_p = jnp.pad(x, ((0, bp - B), (0, sp - S), (0, dp - D)))
    w_p = jnp.pad(weight, ((0, dp - D), (0, cp - C)))
    b_p = jnp.pad(bias, (0, cp - C)).reshape(1, cp)
    if compute_dtype is not None:
        x_p = x_p.astype(compute_dtype)
        w_p = w_p.astype(compute_dtype)

    kernel = functools.partial(_maxpool_head_kernel,
                               ts=ts, s_actual=S, s_padded=sp)

    out = pl.pallas_call(
        kernel,
        out_shape=jax.ShapeDtypeStruct((bp, cp), out_dtype),
        grid_spec=pltpu.PrefetchScalarGridSpec(
            num_scalar_prefetch=0,
            grid=(bp // tb, sp // ts),          # reduction (seq) axis last
            in_specs=[
                pl.BlockSpec((tb, ts, dp), lambda bi, si: (bi, si, 0)),
                pl.BlockSpec((dp, cp), lambda bi, si: (0, 0)),   # weight resident
                pl.BlockSpec((1, cp), lambda bi, si: (0, 0)),    # bias resident
            ],
            out_specs=pl.BlockSpec((tb, cp), lambda bi, si: (bi, 0)),
            scratch_shapes=[pltpu.VMEM((tb, cp), jnp.float32)],
        ),
        compiler_params=pltpu.CompilerParams(
            dimension_semantics=("parallel", "arbitrary"),
            vmem_limit_bytes=48 << 20,
        ),
    )(x_p, w_p, b_p)

    return out[:B, :C]


if __name__ == "__main__":
    key = jax.random.PRNGKey(0)
    k1, k2 = jax.random.split(key)

    def ref_fn(x, w, b):
        return jnp.max(jnp.einsum("bsd,dc->bsc", x, w) + b, axis=1)

    # --- Case 1: small shapes consistent with the module (batch=2, seq=8,
    #             hidden=32, n_classes=2) ---
    B, S, D, C = 2, 8, 32, 2
    kx, kw, kb = jax.random.split(k1, 3)
    bound = 1.0 / math.sqrt(D)
    x = jax.random.normal(kx, (B, S, D), dtype=jnp.float32)
    w = jax.random.uniform(kw, (D, C), minval=-bound, maxval=bound,
                           dtype=jnp.float32)
    b = jax.random.uniform(kb, (C,), minval=-bound, maxval=bound,
                           dtype=jnp.float32)

    out = jax.block_until_ready(max_pooling_forward(x, w, b))
    assert out.shape == (B, C)
    assert jnp.allclose(out, ref_fn(x, w, b), atol=1e-5, rtol=1e-5)

    # --- Case 2: ragged shapes that exercise sequence tiling, padding and the
    #             -inf masking path (tiny block budget forces TS=8, 3 seq tiles).
    B2, S2, D2, C2 = 3, 20, 40, 5
    kx2, kw2, kb2 = jax.random.split(k2, 3)
    bound2 = 1.0 / math.sqrt(D2)
    x2 = jax.random.normal(kx2, (B2, S2, D2), dtype=jnp.float32)
    w2 = jax.random.uniform(kw2, (D2, C2), minval=-bound2, maxval=bound2,
                            dtype=jnp.float32)
    b2 = jax.random.uniform(kb2, (C2,), minval=-bound2, maxval=bound2,
                            dtype=jnp.float32)

    out2 = jax.block_until_ready(
        max_pooling_forward(x2, w2, b2, max_x_block_bytes=8 * 8 * 128 * 4))
    assert out2.shape == (B2, C2)
    assert jnp.allclose(out2, ref_fn(x2, w2, b2), atol=1e-5, rtol=1e-5)

    print("KERNEL_OK")
</pallas_src>

<mosaic_0001>
module attributes {stable_mosaic.version = 11 : i64} {
  func.func @_maxpool_head_kernel(%arg0: i32, %arg1: i32, %arg2: memref<8x8x128xf32, #tpu.memory_space<vmem>>, %arg3: memref<128x128xf32, #tpu.memory_space<vmem>>, %arg4: memref<1x128xf32, #tpu.memory_space<vmem>>, %arg5: memref<8x128xf32, #tpu.memory_space<vmem>>, %arg6: memref<8x128xf32, #tpu.memory_space<vmem>>) attributes {dimension_semantics = [#tpu.dimension_semantics<parallel>, #tpu.dimension_semantics<arbitrary>], iteration_bounds = array<i64: 1, 1>, scalar_prefetch = 0 : i64, scratch_operands = 1 : i64, tpu.core_type = #tpu.core_type<tc>, window_params = [{transform_indices = @transform_0, window_bounds = array<i64: 8, 8, 128>}, {pipeline_mode = #tpu.pipeline_mode<synchronous>, transform_indices = @transform_1, window_bounds = array<i64: 128, 128>}, {pipeline_mode = #tpu.pipeline_mode<synchronous>, transform_indices = @transform_2, window_bounds = array<i64: 1, 128>}, {transform_indices = @transform_3, window_bounds = array<i64: 8, 128>}]} {
    %c0_i32 = arith.constant 0 : i32
    %0 = arith.cmpi eq, %arg1, %c0_i32 : i32
    %1 = arith.extui %0 : i1 to i32
    %c0_i32_0 = arith.constant 0 : i32
    %2 = arith.cmpi ne, %1, %c0_i32_0 : i32
    scf.if %2 {
      %cst_12 = arith.constant 0xFF800000 : f32
      %15 = vector.broadcast %cst_12 : f32 to vector<8x128xf32>
      %c0_13 = arith.constant 0 : index
      %c0_14 = arith.constant 0 : index
      %16 = vector.load %arg6[%c0_13, %c0_14] : memref<8x128xf32, #tpu.memory_space<vmem>>, vector<8x128xf32>
      tpu.vector_store %arg6[%c0_13, %c0_14], %15 {strides = array<i32>} : memref<8x128xf32, #tpu.memory_space<vmem>>, vector<8x128xf32>,
    } else {
    }
    %c0 = arith.constant 0 : index
    %c0_1 = arith.constant 0 : index
    %c0_2 = arith.constant 0 : index
    %3 = vector.load %arg2[%c0, %c0_1, %c0_2] : memref<8x8x128xf32, #tpu.memory_space<vmem>>, vector<8x8x128xf32>
    %4 = vector.shape_cast %3 : vector<8x8x128xf32> to vector<64x128xf32>
    %c0_3 = arith.constant 0 : index
    %c0_4 = arith.constant 0 : index
    %5 = vector.load %arg3[%c0_3, %c0_4] : memref<128x128xf32, #tpu.memory_space<vmem>>, vector<128x128xf32>
    %cst = arith.constant dense<0.000000e+00> : vector<64x128xf32>
    %6 = tpu.matmul %4, %5, %cst {dimension_numbers = #tpu.dot_dimension_numbers<[1], [0], [0], [1], [0, 0, 1, 1], [], []>} : vector<64x128xf32>, vector<128x128xf32>, vector<64x128xf32> -> vector<64x128xf32>
    %7 = vector.shape_cast %6 : vector<64x128xf32> to vector<8x8x128xf32>
    %c0_5 = arith.constant 0 : index
    %c0_6 = arith.constant 0 : index
    %8 = vector.load %arg6[%c0_5, %c0_6] : memref<8x128xf32, #tpu.memory_space<vmem>>, vector<8x128xf32>
    %cst_7 = arith.constant dense<0xFF800000> : vector<8x128xf32>
    %9 = vector.multi_reduction <maximumf>, %7, %cst_7 [1] : vector<8x8x128xf32> to vector<8x128xf32>
    %10 = arith.maximumf %8, %9 : vector<8x128xf32>
    %c0_8 = arith.constant 0 : index
    %c0_9 = arith.constant 0 : index
    %11 = vector.load %arg6[%c0_8, %c0_9] : memref<8x128xf32, #tpu.memory_space<vmem>>, vector<8x128xf32>
    tpu.vector_store %arg6[%c0_8, %c0_9], %10 {strides = array<i32>} : memref<8x128xf32, #tpu.memory_space<vmem>>, vector<8x128xf32>,
    %c0_i32_10 = arith.constant 0 : i32
    %12 = arith.cmpi eq, %arg1, %c0_i32_10 : i32
    %13 = arith.extui %12 : i1 to i32
    %c0_i32_11 = arith.constant 0 : i32
    %14 = arith.cmpi ne, %13, %c0_i32_11 : i32
    scf.if %14 {
      %c0_12 = arith.constant 0 : index
      %c0_13 = arith.constant 0 : index
      %15 = vector.load %arg6[%c0_12, %c0_13] : memref<8x128xf32, #tpu.memory_space<vmem>>, vector<8x128xf32>
      %c0_14 = arith.constant 0 : index
      %c0_15 = arith.constant 0 : index
      %16 = vector.load %arg4[%c0_14, %c0_15] : memref<1x128xf32, #tpu.memory_space<vmem>>, vector<1x128xf32>
      %17 = vector.broadcast %16 : vector<1x128xf32> to vector<8x128xf32>
      %18 = arith.addf %15, %17 : vector<8x128xf32>
      %c0_16 = arith.constant 0 : index
      %c0_17 = arith.constant 0 : index
      %19 = vector.load %arg5[%c0_16, %c0_17] : memref<8x128xf32, #tpu.memory_space<vmem>>, vector<8x128xf32>
      tpu.vector_store %arg5[%c0_16, %c0_17], %18 {strides = array<i32>} : memref<8x128xf32, #tpu.memory_space<vmem>>, vector<8x128xf32>,
    } else {
    }
    return
  }
  func.func @transform_0(%arg0: i32, %arg1: i32) -> (i32, i32, i32) {
    %c0_i32 = arith.constant 0 : i32
    %c0_i32_0 = arith.constant 0 : i32
    return %arg0, %arg1, %c0_i32 : i32, i32, i32
  }
  func.func @transform_1(%arg0: i32, %arg1: i32) -> (i32, i32) {
    %c0_i32 = arith.constant 0 : i32
    %c0_i32_0 = arith.constant 0 : i32
    %c0_i32_1 = arith.constant 0 : i32
    return %c0_i32, %c0_i32_0 : i32, i32
  }
  func.func @transform_2(%arg0: i32, %arg1: i32) -> (i32, i32) {
    %c0_i32 = arith.constant 0 : i32
    %c0_i32_0 = arith.constant 0 : i32
    %c0_i32_1 = arith.constant 0 : i32
    return %c0_i32, %c0_i32_0 : i32, i32
  }
  func.func @transform_3(%arg0: i32, %arg1: i32) -> (i32, i32) {
    %c0_i32 = arith.constant 0 : i32
    %c0_i32_0 = arith.constant 0 : i32
    return %arg0, %c0_i32 : i32, i32
  }
}

</mosaic_0001>

<bundles_post_ra>
// kernel: tpu_custom_call.1
= control target key start
LH: loop header
LB: loop body
LE: loop exit
PB: predicated region body
PF: predicated region fallthrough
CT: control target
= control target key end

     0   :  { %8 = vsyncpa [#allocation4], 0  ;;  %s538_s0 = inlined_call_operand.hbm [shape: f32[8,8,128], index: 0, kind: input, shape index: {}]   ;;  %s539_s1 = inlined_call_operand.hbm [shape: f32[128,128], index: 1, kind: input, shape index: {}]   ;;  %s540_s2 = inlined_call_operand.vmem [shape: f32[1,128], index: 2, kind: input, shape index: {}]   ;;  %s541_s3 = inlined_call_operand.hbm [shape: f32[8,128], index: 3, kind: output, shape index: {}]  }
   0x1   :  { %9 = vsyncpa [#allocation7], 0 }
   0x2   :  { %10 = vsyncpa [#allocation5], 0  ;;  %s474_s12 = smov [#allocation3]   ;;  %s402_s16 = scalar_lea.hbm %s538_s0, 1024 }
   0x3   :  { %s16_s13 = sshll.u32 %s474_s12, 4  ;;  %p403_p0 = scmp.ne.s32.totalorder %s538_s0, %s402_s16  ;;  %s17_s13 = int_to_ptr.vmem [resolvable:$true] %s16_s13 }
   0x4   :  { %p406_p1 = scmp.lt.u32.totalorder %s402_s16, %s538_s0 }
   0x6   :  { %p408_p2 = pnand %p406_p1, %p403_p0 }
   0x8   :  { %411 = shalt.err (!%p408_p2)
}
   0x9   :  { %s412_s21 = scalar_lea.vmem %s17_s13, 1024  ;;  %p417_p4 = scmp.lt.s32.totalorder %s17_s13, %s17_s13 }
   0xa   :  { %p413_p3 = scmp.ne.s32.totalorder %s17_s13, %s412_s21  ;;  %p418_p5 = scmp.lt.s32.totalorder %s412_s21, %s412_s21 }
   0xc   :  { %p419_p6 = por %p418_p5, %p417_p4 }
   0xe   :  { %p420_p7 = pnand %p419_p6, %p413_p3 }
  0x10   :  { %423 = shalt.err (!%p420_p7)
}
  0x11   :  { %s475_s22 = smov 128   ;;  %s476_s23 = smov 8  }
  0x12   :  { %22 = dma.hbm_to_vmem [thread:$0]  %s538_s0, 1024, %s17_s13, [#allocation4], %s475_s22, %s475_s22, %s476_s23  }
  0x13   :  { %s477_s26 = smov [#allocation6]   ;;  %s424_s30 = scalar_lea.hbm %s539_s1, 2048 }
  0x14   :  { %s28_s27 = sshll.u32 %s477_s26, 4  ;;  %p425_p8 = scmp.ne.s32.totalorder %s539_s1, %s424_s30  ;;  %s29_s27 = int_to_ptr.vmem [resolvable:$true] %s28_s27 }
  0x15   :  { %p428_p9 = scmp.lt.u32.totalorder %s424_s30, %s539_s1 }
  0x17   :  { %p430_p10 = pnand %p428_p9, %p425_p8 }
  0x19   :  { %433 = shalt.err (!%p430_p10)
}
  0x1a   :  { %s434_s8 = scalar_lea.vmem %s29_s27, 2048  ;;  %p439_p12 = scmp.lt.s32.totalorder %s29_s27, %s29_s27 }
  0x1b   :  { %p435_p11 = scmp.ne.s32.totalorder %s29_s27, %s434_s8  ;;  %p440_p13 = scmp.lt.s32.totalorder %s434_s8, %s434_s8 }
  0x1d   :  { %p441_p0 = por %p440_p13, %p439_p12 }
  0x1f   :  { %p442_p1 = pnand %p441_p0, %p435_p11 }
  0x21   :  { %445 = shalt.err (!%p442_p1)
}
  0x22   :  { %34 = dma.hbm_to_vmem [thread:$0]  %s539_s1, 2048, %s29_s27, [#allocation7], %s475_s22, %s475_s22, %s476_s23  }
  0x23   :  { %468 = dma.done.wait [#allocation4], 1024  }
  0x24   :  { %469 = vsyncadd [#allocation4], 4294966272 }
  0x25   :  { %470 = dma.done.wait [#allocation7], 2048  }
  0x26   :  { %471 = vsyncadd [#allocation7], 4294965248  ;;  %v56_v0 = vld [vmem:[#allocation6] sm:$0xff]  ;;  %v57_v1 = vld [vmem:[#allocation6 + $0x8] sm:$0xff]  ;;  %vm234_vm0 = vcmask 1041409   ;;  %vm236_vm1 = vcmask 1042434  }
  0x27   :  { %v58_v2 = vld [vmem:[#allocation6 + $0x10] sm:$0xff]  ;;  %v349_v3 = vpack.c.bf16 %v57_v1, %v56_v0  ;;  %v59_v4 = vld [vmem:[#allocation6 + $0x18] sm:$0xff]  ;;  %v60_v6 = vld [vmem:[#allocation6 + $0x20] sm:$0xff]  ;;  %vm238_vm2 = vcmask 1043459   ;;  %vm240_vm3 = vcmask 1044484   ;;  %vm242_vm4 = vcmask 1045509  }
  0x28   :  { %v353_v5 = vpack.c.bf16 %v59_v4, %v58_v2  ;;  %v61_v7 = vld [vmem:[#allocation6 + $0x28] sm:$0xff]  ;;  %v48_v9 = vld [vmem:[#allocation3] sm:$0xff]  ;;  %v62_v11 = vld [vmem:[#allocation6 + $0x30] sm:$0xff]  ;;  %vm244_vm5 = vcmask 1046534   ;;  %vm246_vm6 = vcmask 1047559   ;;  %s478_s11 = smov [#allocation8]  }
  0x29   :  { %350 = vmatprep.subr.bf16.mxu0 %v349_v3  ;;  %381 = vmatprep.subr.bf16.mxu1 %v349_v3  ;;  %v357_v8 = vpack.c.bf16 %v61_v7, %v60_v6  ;;  %v52_v10 = vld [vmem:[#allocation3 + $0x20] sm:$0xff]  ;;  %v63_v12 = vld [vmem:[#allocation6 + $0x38] sm:$0xff]  ;;  %v65_v15 = vld [vmem:[#allocation6 + $0x48] sm:$0xff]  ;;  %s270_s12 = sshll.u32 %s478_s11, 4  ;;  %s271_s12 = int_to_ptr.vmem [resolvable:$true] %s270_s12 }
  0x2a   :  { %352 = vmatpush3.bf16.msra.mxu0 %v349_v3  ;;  %389 = vmatpush3.bf16.msra.mxu1 %v349_v3  ;;  %v361_v13 = vpack.c.bf16 %v63_v12, %v62_v11  ;;  %v64_v14 = vld [vmem:[#allocation6 + $0x40] sm:$0xff]  ;;  %v66_v17 = vld [vmem:[#allocation6 + $0x50] sm:$0xff]  ;;  %v67_v18 = vld [vmem:[#allocation6 + $0x58] sm:$0xff]  ;;  %s446_s13 = scalar_lea.vmem %s271_s12, 128  ;;  %p451_p3 = scmp.lt.s32.totalorder %s271_s12, %s271_s12 }
  0x2b   :  { %354 = vmatprep.subr.bf16.mxu0 %v353_v5  ;;  %382 = vmatprep.subr.bf16.mxu1 %v353_v5  ;;  %v365_v16 = vpack.c.bf16 %v65_v15, %v64_v14  ;;  %v369_v19 = vpack.c.bf16 %v67_v18, %v66_v17  ;;  %v68_v20 = vld [vmem:[#allocation6 + $0x60] sm:$0xff]  ;;  %v69_v21 = vld [vmem:[#allocation6 + $0x68] sm:$0xff]  ;;  %v70_v23 = vld [vmem:[#allocation6 + $0x70] sm:$0xff]  ;;  %p447_p2 = scmp.ne.s32.totalorder %s271_s12, %s446_s13  ;;  %p452_p4 = scmp.lt.s32.totalorder %s446_s13, %s446_s13 }
  0x2c   :  { %337 = vmatprep.mubr.f32.mxu0 %v48_v9  ;;  %343 = vmatprep.mubr.f32.mxu1 %v52_v10  ;;  %v373_v22 = vpack.c.bf16 %v69_v21, %v68_v20  ;;  %v71_v24 = vld [vmem:[#allocation6 + $0x78] sm:$0xff]  ;;  %v49_v26 = vld [vmem:[#allocation3 + $0x8] sm:$0xff]  ;;  %v50_v28 = vld [vmem:[#allocation3 + $0x10] sm:$0xff] }
  0x2d   :  { %v377_v25 = vpack.c.bf16 %v71_v24, %v70_v23  ;;  %v53_v27 = vld [vmem:[#allocation3 + $0x28] sm:$0xff]  ;;  %v54_v29 = vld [vmem:[#allocation3 + $0x30] sm:$0xff]  ;;  %v51_v30 = vld [vmem:[#allocation3 + $0x18] sm:$0xff]  ;;  %p453_p5 = por %p452_p4, %p451_p3 }
  0x2e   :  { %356 = vmatpush3.bf16.msra.mxu0 %v353_v5  ;;  %390 = vmatpush3.bf16.msra.mxu1 %v353_v5  ;;  %v55_v31 = vld [vmem:[#allocation3 + $0x38] sm:$0xff] }
  0x2f   :  { %358 = vmatprep.subr.bf16.mxu0 %v357_v8  ;;  %383 = vmatprep.subr.bf16.mxu1 %v357_v8  ;;  %p454_p6 = pnand %p453_p5, %p447_p2 }
  0x32   :  { %360 = vmatpush3.bf16.msra.mxu0 %v357_v8  ;;  %391 = vmatpush3.bf16.msra.mxu1 %v357_v8 }
  0x33   :  { %362 = vmatprep.subr.bf16.mxu0 %v361_v13  ;;  %384 = vmatprep.subr.bf16.mxu1 %v361_v13 }
  0x36   :  { %364 = vmatpush3.bf16.msra.mxu0 %v361_v13  ;;  %392 = vmatpush3.bf16.msra.mxu1 %v361_v13 }
  0x37   :  { %366 = vmatprep.subr.bf16.mxu0 %v365_v16  ;;  %385 = vmatprep.subr.bf16.mxu1 %v365_v16 }
  0x3a   :  { %368 = vmatpush3.bf16.msra.mxu0 %v365_v16  ;;  %393 = vmatpush3.bf16.msra.mxu1 %v365_v16 }
  0x3b   :  { %370 = vmatprep.subr.bf16.mxu0 %v369_v19  ;;  %386 = vmatprep.subr.bf16.mxu1 %v369_v19 }
  0x3e   :  { %372 = vmatpush3.bf16.msra.mxu0 %v369_v19  ;;  %394 = vmatpush3.bf16.msra.mxu1 %v369_v19 }
  0x3f   :  { %374 = vmatprep.subr.bf16.mxu0 %v373_v22  ;;  %387 = vmatprep.subr.bf16.mxu1 %v373_v22 }
  0x42   :  { %376 = vmatpush3.bf16.msra.mxu0 %v373_v22  ;;  %395 = vmatpush3.bf16.msra.mxu1 %v373_v22 }
  0x43   :  { %378 = vmatprep.subr.bf16.mxu0 %v377_v25  ;;  %388 = vmatprep.subr.bf16.mxu1 %v377_v25 }
  0x46   :  { %380 = vmatpush3.bf16.msra.mxu0 %v377_v25  ;;  %396 = vmatpush3.bf16.msra.mxu1 %v377_v25 }
  0x49   :  { %338 = vmatmul.mubr.f32.vlgmr.msra.gmra.mrb[0].mxu0 %v49_v26  ;;  %344 = vmatmul.mubr.f32.vlgmr.msra.gmra.mrb[0].mxu1 %v53_v27 }
  0x4a   :  { %340 = vmatprep.mubr.f32.mxu0 %v50_v28  ;;  %346 = vmatprep.mubr.f32.mxu1 %v54_v29  ;;  %v280_v29 = vld [vmem:[%s540_s2] ss:$0 sm:$0xff] }
  0x4d   :  { %341 = vmatmul.mubr.f32.gmra.mrb[2].mxu0 %v51_v30  ;;  %347 = vmatmul.mubr.f32.gmra.mrb[2].mxu1 %v55_v31 }
 0x11c   :  { %v339_v32 = vpop.f32.mrb[0].mxu0  ;;  %v345_v33 = vpop.f32.mrb[0].mxu1 }
 0x11d   :  { %v184_v34 = vrot.slane %v339_v32, 4  ;;  %v208_v35 = vrot.slane %v345_v33, 4  ;;  %v138_v36 = vpop.f32.mrb[1].mxu0  ;;  %v158_v37 = vpop.f32.mrb[1].mxu1 }
 0x11e   :  { %v178_v38 = vrot.slane %v138_v36, 4  ;;  %v202_v39 = vrot.slane %v158_v37, 4 }
 0x11f   :  { %v185_v40 = vmax.f32 %v339_v32, %v184_v34  ;;  %v209_v41 = vmax.f32 %v345_v33, %v208_v35 }
 0x120   :  { %v179_v42 = vmax.f32 %v138_v36, %v178_v38  ;;  %v203_v43 = vmax.f32 %v158_v37, %v202_v39  ;;  %v342_v44 = vpop.f32.mrb[2].mxu0  ;;  %v348_v45 = vpop.f32.mrb[2].mxu1 }
 0x121   :  { %v186_v46 = vrot.slane %v185_v40, 2  ;;  %v196_v47 = vrot.slane %v342_v44, 4  ;;  %v220_v48 = vrot.slane %v348_v45, 4  ;;  %v148_v49 = vpop.f32.mrb[3].mxu0  ;;  %v168_v50 = vpop.f32.mrb[3].mxu1  ;;  %v210_v56 = vrot.slane %v209_v41, 2 }
 0x122   :  { %v180_v51 = vrot.slane %v179_v42, 2  ;;  %v204_v52 = vrot.slane %v203_v43, 2  ;;  %v190_v53 = vrot.slane %v148_v49, 4  ;;  %v214_v54 = vrot.slane %v168_v50, 4 }
 0x123   :  { %v187_v55 = vmax.f32 %v185_v40, %v186_v46  ;;  %v197_v57 = vmax.f32 %v342_v44, %v196_v47  ;;  %v221_v58 = vmax.f32 %v348_v45, %v220_v48  ;;  %v211_v6 = vmax.f32 %v209_v41, %v210_v56 }
 0x124   :  { %v181_v59 = vmax.f32 %v179_v42, %v180_v51  ;;  %v191_v60 = vmax.f32 %v148_v49, %v190_v53  ;;  %v215_v61 = vmax.f32 %v168_v50, %v214_v54  ;;  %v205_v2 = vmax.f32 %v203_v43, %v204_v52 }
 0x125   :  { %v188_v62 = vrot.slane %v187_v55, 1  ;;  %v198_v63 = vrot.slane %v197_v57, 2  ;;  %v222_v0 = vrot.slane %v221_v58, 2  ;;  %v212_v16 = vrot.slane %v211_v6, 1 }
 0x126   :  { %v182_v1 = vrot.slane %v181_v59, 1  ;;  %v192_v3 = vrot.slane %v191_v60, 2  ;;  %v216_v4 = vrot.slane %v215_v61, 2  ;;  %v206_v14 = vrot.slane %v205_v2, 1 }
 0x127   :  { %v189_v5 = vmax.f32 %v187_v55, %v188_v62  ;;  %v199_v7 = vmax.f32 %v197_v57, %v198_v63  ;;  %v223_v12 = vmax.f32 %v221_v58, %v222_v0  ;;  %v213_v23 = vmax.f32 %v211_v6, %v212_v16 }
 0x128   :  { %v183_v8 = vmax.f32 %v181_v59, %v182_v1  ;;  %v193_v9 = vmax.f32 %v191_v60, %v192_v3  ;;  %v217_v10 = vmax.f32 %v215_v61, %v216_v4  ;;  %v207_v21 = vmax.f32 %v205_v2, %v206_v14 }
 0x129   :  { %v200_v11 = vrot.slane %v199_v7, 1  ;;  %v224_v20 = vrot.slane %v223_v12, 1 }
 0x12a   :  { %v235_v13 = vsel %vm234_vm0, %v189_v5, %v183_v8  ;;  %v194_v15 = vrot.slane %v193_v9, 1  ;;  %v218_v18 = vrot.slane %v217_v10, 1 }
 0x12b   :  { %v201_v19 = vmax.f32 %v199_v7, %v200_v11  ;;  %v225_v27 = vmax.f32 %v223_v12, %v224_v20 }
 0x12c   :  { %v195_v17 = vmax.f32 %v193_v9, %v194_v15  ;;  %v219_v25 = vmax.f32 %v217_v10, %v218_v18 }
 0x12e   :  { %v237_v22 = vsel %vm236_vm1, %v195_v17, %v235_v13 }
 0x12f   :  { %v239_v24 = vsel %vm238_vm2, %v201_v19, %v237_v22 }
 0x130   :  { %v241_v26 = vsel %vm240_vm3, %v207_v21, %v239_v24 }
 0x131   :  { %v243_v28 = vsel %vm242_vm4, %v213_v23, %v241_v26 }
 0x132   :  { %v245_v30 = vsel %vm244_vm5, %v219_v25, %v243_v28 }
 0x133   :  { %v247_v31 = vsel %vm246_vm6, %v225_v27, %v245_v30 }
 0x134   :  { %v262_v32 = vadd.f32 %v280_v29, %v247_v31 }
 0x136   :  { %263 = vst [vmem:[#allocation8] sm:$0xff] %v262_v32 }
 0x137   :  { %457 = shalt.err (!%p454_p6)
}
 0x138   :  { %s458_s16 = scalar_lea.hbm %s541_s3, 128 }
 0x139   :  { %p459_p7 = scmp.ne.s32.totalorder %s541_s3, %s458_s16  ;;  %p462_p8 = scmp.lt.u32.totalorder %s458_s16, %s541_s3 }
 0x13b   :  { %p464_p9 = pnand %p462_p8, %p459_p7 }
 0x13d   :  { %467 = shalt.err (!%p464_p9)
}
 0x13e   :  { %273 = dma.vmem_to_hbm [thread:$0]  %s271_s12, 128, %s541_s3, [#allocation5]  }
 0x13f   :  { %472 = dma.done.wait [#allocation5], 128  }
 0x140   :  { %473 = vsyncadd [#allocation5], 4294967168 }
 0x141   :  { %277 = vsyncpa [#allocation4], 1 }
 0x142   :  { %278 = vsyncpa [#allocation7], 1 }
 0x143   :  { %279 = vsyncpa [#allocation5], 1 }

</bundles_post_ra>
